<compile_context>
chip_gen: v6e
topology: v6e:2x2x1
jax: 0.10.0
libtpu: 0.0.40
codegen_flags: <defaults>
</compile_context>

<pallas_src>
import functools

import numpy as np
import jax
import jax.numpy as jnp
from jax.experimental import pallas as pl
from jax.experimental.pallas import tpu as pltpu


# ---------------------------------------------------------------------------
# Kernel: TB images, each a (C, HW) slab, fully VMEM-resident.
# ---------------------------------------------------------------------------
def se_block_kernel(x_ref, w1_ref, b1_ref, w2_ref, b2_ref, o_ref, *, inv_hw):
    f32 = jnp.float32
    x = x_ref[...]                                          # (TB, C, HW), input dtype

    # Squeeze: global average pool over the spatial (lane) axis.
    # Accumulate in f32 (required for bf16 inputs) without keeping an f32
    # copy of the slab live for the rest of the kernel.
    s = jnp.sum(x, axis=2, dtype=f32) * inv_hw              # (TB, C) f32, C on lanes

    # Excitation (lane-major): weights are PyTorch (out, in) layout, so both
    # matvecs contract the lane axis directly -- no transposes.
    h = jax.lax.dot_general(s, w1_ref[...], (((1,), (1,)), ((), ())),
                            preferred_element_type=f32)     # (TB, hidden)
    h = jnp.maximum(h + b1_ref[...], 0.0)
    g = jax.lax.dot_general(h, w2_ref[...], (((1,), (1,)), ((), ())),
                            preferred_element_type=f32)     # (TB, C)
    g = jax.nn.sigmoid(g + b2_ref[...])

    # Scale: cast the tiny gate DOWN to the activation dtype and broadcast it
    # over the spatial lanes; the multiply and store stay in the input dtype.
    gate = g.astype(o_ref.dtype)[:, :, None]                # (TB, C, 1)
    o_ref[...] = x * gate


# ---------------------------------------------------------------------------
# Block-size selection: fat DMAs, VMEM-budget safe (v7x), grid kept parallel.
# ---------------------------------------------------------------------------
def _pick_images_per_block(batch, per_image_bytes,
                           budget_bytes=40 << 20,   # 4 * block must fit (v7x-safe)
                           target_bytes=1 << 20,    # aim for >= ~1 MiB per DMA
                           min_steps=4):            # keep >=2 steps per TC on v7x
    divisors = [d for d in range(1, batch + 1)
                if batch % d == 0 and 4 * d * per_image_bytes <= budget_bytes]
    if not divisors:
        return 1  # single image already huge; see 2-pass TODO above
    keep_parallel = [d for d in divisors if batch // d >= min(min_steps, batch)]
    candidates = keep_parallel if keep_parallel else divisors
    for d in candidates:                     # smallest TB that already reaches target
        if d * per_image_bytes >= target_bytes:
            return d
    return max(candidates)                   # otherwise the fattest block allowed


# ---------------------------------------------------------------------------
# Wrapper
# ---------------------------------------------------------------------------
def se_block_forward(x, params):
    """x: (B, C, H, W) NCHW (f32 or bf16).
    params: w1 (C//r, C), b1 (C//r,), w2 (C, C//r), b2 (C,)  -- PyTorch layout."""
    B, C, H, W = x.shape
    HW = H * W
    w1, b1, w2, b2 = params["w1"], params["b1"], params["w2"], params["b2"]
    hidden = w1.shape[0]
    b1_2d = b1.reshape(1, hidden).astype(jnp.float32)
    b2_2d = b2.reshape(1, C).astype(jnp.float32)

    itemsize = jnp.dtype(x.dtype).itemsize
    per_image_bytes = C * HW * itemsize
    TB = _pick_images_per_block(B, per_image_bytes)
    block_bytes = TB * per_image_bytes

    weight_bytes = (w1.size + w2.size + b1.size + b2.size) * 4
    vmem_limit = int(min(max(4 * block_bytes + 4 * weight_bytes + (2 << 20),
                             16 << 20),
                         48 << 20))

    flops = 2 * B * C * HW + 4 * B * C * hidden       # pool + scale + two matvecs
    cost = pl.CostEstimate(
        flops=flops,
        transcendentals=B * C,                          # sigmoid
        bytes_accessed=2 * B * C * HW * itemsize + weight_bytes,
    )

    xf = x.reshape(B, C, HW)
    kernel = functools.partial(se_block_kernel, inv_hw=float(1.0 / HW))

    out = pl.pallas_call(
        kernel,
        out_shape=jax.ShapeDtypeStruct((B, C, HW), x.dtype),
        grid=(B // TB,),
        in_specs=[
            # TB images per grid step (last two dims = full array dims)
            pl.BlockSpec((TB, C, HW), lambda b: (b, 0, 0)),
            # weights / biases: constant index_map -> VMEM-resident across the grid
            pl.BlockSpec((hidden, C), lambda b: (0, 0)),
            pl.BlockSpec((1, hidden), lambda b: (0, 0)),
            pl.BlockSpec((C, hidden), lambda b: (0, 0)),
            pl.BlockSpec((1, C), lambda b: (0, 0)),
        ],
        out_specs=pl.BlockSpec((TB, C, HW), lambda b: (b, 0, 0)),
        compiler_params=pltpu.CompilerParams(
            dimension_semantics=("parallel",),   # batch blocks independent; megacore on v7x
            vmem_limit_bytes=vmem_limit,
        ),
        cost_estimate=cost,
    )(xf, w1, b1_2d, w2, b2_2d)

    return out.reshape(B, C, H, W)


# ---------------------------------------------------------------------------
# Pure-JAX reference (same math) for a silent correctness check.
# ---------------------------------------------------------------------------
def se_block_ref(x, params):
    w1, b1, w2, b2 = params["w1"], params["b1"], params["w2"], params["b2"]
    xf = x.astype(jnp.float32)
    s = xf.mean(axis=(2, 3))                              # (B, C)
    h = jax.nn.relu(s @ w1.T + b1)                        # (B, C//r)
    g = jax.nn.sigmoid(h @ w2.T + b2)                     # (B, C)
    return xf * g[:, :, None, None]


# ---------------------------------------------------------------------------
# Deterministic parameter init (PyTorch-Linear-like uniform(+/-1/sqrt(fan_in))).
# ---------------------------------------------------------------------------
def make_params(key, channels, reduction):
    hidden = channels // reduction

    def linear(k, fan_in, fan_out):
        kw, kb = jax.random.split(k)
        bound = 1.0 / np.sqrt(fan_in)
        w = jax.random.uniform(kw, (fan_out, fan_in), jnp.float32, -bound, bound)
        b = jax.random.uniform(kb, (fan_out,), jnp.float32, -bound, bound)
        return w, b

    k1, k2 = jax.random.split(key)
    w1, b1 = linear(k1, channels, hidden)     # Linear(C, C//r)
    w2, b2 = linear(k2, hidden, channels)     # Linear(C//r, C)
    return {"w1": w1, "b1": b1, "w2": w2, "b2": b2}


if __name__ == "__main__":
    C, H, W = 64, 16, 16
    REDUCTION = 16   # hidden = 4, matching nn.Linear(channels, channels // reduction)

    root = jax.random.PRNGKey(0)
    kp, kx1, kx2 = jax.random.split(root, 3)
    params = make_params(kp, C, REDUCTION)

    # Test 1: f32 activations, B=2 (TB=1, grid=(2,)).
    x = jax.random.normal(kx1, (2, C, H, W), jnp.float32)
    out = se_block_forward(x, params)
    jax.block_until_ready(out)
    np.testing.assert_allclose(np.asarray(out), np.asarray(se_block_ref(x, params)),
                               rtol=1e-3, atol=1e-3)

    # Test 2: bf16 activations, B=8 (exercises TB=2 multi-image blocks, grid=(4,)
    # and the f32-accumulated mean / gate-downcast path).
    xb = jax.random.normal(kx2, (8, C, H, W), jnp.float32).astype(jnp.bfloat16)
    outb = se_block_forward(xb, params)
    jax.block_until_ready(outb)
    ref_b = se_block_ref(xb, params)
    np.testing.assert_allclose(np.asarray(outb.astype(jnp.float32)), np.asarray(ref_b),
                               rtol=2e-2, atol=2e-2)

    print("KERNEL_OK")
</pallas_src>

<mosaic_0001>
module attributes {stable_mosaic.version = 11 : i64} {
  func.func @se_block_kernel(%arg0: i32, %arg1: memref<1x64x256xf32, #tpu.memory_space<vmem>>, %arg2: memref<4x64xf32, #tpu.memory_space<vmem>>, %arg3: memref<1x4xf32, #tpu.memory_space<vmem>>, %arg4: memref<64x4xf32, #tpu.memory_space<vmem>>, %arg5: memref<1x64xf32, #tpu.memory_space<vmem>>, %arg6: memref<1x64x256xf32, #tpu.memory_space<vmem>>) attributes {dimension_semantics = [#tpu.dimension_semantics<parallel>], iteration_bounds = array<i64: 2>, scalar_prefetch = 0 : i64, scratch_operands = 0 : i64, tpu.core_type = #tpu.core_type<tc>, window_params = [{transform_indices = @transform_0, window_bounds = array<i64: 1, 64, 256>}, {pipeline_mode = #tpu.pipeline_mode<synchronous>, transform_indices = @transform_1, window_bounds = array<i64: 4, 64>}, {pipeline_mode = #tpu.pipeline_mode<synchronous>, transform_indices = @transform_2, window_bounds = array<i64: 1, 4>}, {pipeline_mode = #tpu.pipeline_mode<synchronous>, transform_indices = @transform_3, window_bounds = array<i64: 64, 4>}, {pipeline_mode = #tpu.pipeline_mode<synchronous>, transform_indices = @transform_4, window_bounds = array<i64: 1, 64>}, {transform_indices = @transform_5, window_bounds = array<i64: 1, 64, 256>}]} {
    %c0 = arith.constant 0 : index
    %c0_0 = arith.constant 0 : index
    %c0_1 = arith.constant 0 : index
    %0 = vector.load %arg1[%c0, %c0_0, %c0_1] : memref<1x64x256xf32, #tpu.memory_space<vmem>>, vector<1x64x256xf32>
    %cst = arith.constant dense<0.000000e+00> : vector<1x64xf32>
    %1 = vector.multi_reduction <add>, %0, %cst [2] : vector<1x64x256xf32> to vector<1x64xf32>
    %cst_2 = arith.constant 3.906250e-03 : f32
    %2 = vector.broadcast %cst_2 : f32 to vector<1x64xf32>
    %3 = arith.mulf %1, %2 : vector<1x64xf32>
    %c0_3 = arith.constant 0 : index
    %c0_4 = arith.constant 0 : index
    %4 = vector.load %arg2[%c0_3, %c0_4] : memref<4x64xf32, #tpu.memory_space<vmem>>, vector<4x64xf32>
    %cst_5 = arith.constant dense<0.000000e+00> : vector<1x4xf32>
    %5 = tpu.matmul %3, %4, %cst_5 {dimension_numbers = #tpu.dot_dimension_numbers<[1], [1], [0], [0], [0, 0, 1, 0], [], []>} : vector<1x64xf32>, vector<4x64xf32>, vector<1x4xf32> -> vector<1x4xf32>
    %c0_6 = arith.constant 0 : index
    %c0_7 = arith.constant 0 : index
    %6 = vector.load %arg3[%c0_6, %c0_7] : memref<1x4xf32, #tpu.memory_space<vmem>>, vector<1x4xf32>
    %7 = arith.addf %5, %6 : vector<1x4xf32>
    %cst_8 = arith.constant 0.000000e+00 : f32
    %8 = vector.broadcast %cst_8 : f32 to vector<1x4xf32>
    %9 = arith.maximumf %7, %8 : vector<1x4xf32>
    %c0_9 = arith.constant 0 : index
    %c0_10 = arith.constant 0 : index
    %10 = vector.load %arg4[%c0_9, %c0_10] : memref<64x4xf32, #tpu.memory_space<vmem>>, vector<64x4xf32>
    %cst_11 = arith.constant dense<0.000000e+00> : vector<1x64xf32>
    %11 = tpu.matmul %9, %10, %cst_11 {dimension_numbers = #tpu.dot_dimension_numbers<[1], [1], [0], [0], [0, 0, 1, 0], [], []>} : vector<1x4xf32>, vector<64x4xf32>, vector<1x64xf32> -> vector<1x64xf32>
    %c0_12 = arith.constant 0 : index
    %c0_13 = arith.constant 0 : index
    %12 = vector.load %arg5[%c0_12, %c0_13] : memref<1x64xf32, #tpu.memory_space<vmem>>, vector<1x64xf32>
    %13 = arith.addf %11, %12 : vector<1x64xf32>
    %14 = arith.negf %13 : vector<1x64xf32>
    %15 = math.exp %14 : vector<1x64xf32>
    %cst_14 = arith.constant 1.000000e+00 : f32
    %16 = vector.broadcast %cst_14 : f32 to vector<1x64xf32>
    %17 = arith.addf %16, %15 : vector<1x64xf32>
    %18 = arith.divf %16, %17 : vector<1x64xf32>
    %19 = vector.shape_cast %18 : vector<1x64xf32> to vector<1x64x1xf32>
    %20 = vector.broadcast %19 : vector<1x64x1xf32> to vector<1x64x256xf32>
    %21 = arith.mulf %0, %20 : vector<1x64x256xf32>
    %c0_15 = arith.constant 0 : index
    %c0_16 = arith.constant 0 : index
    %c0_17 = arith.constant 0 : index
    %22 = vector.load %arg6[%c0_15, %c0_16, %c0_17] : memref<1x64x256xf32, #tpu.memory_space<vmem>>, vector<1x64x256xf32>
    tpu.vector_store %arg6[%c0_15, %c0_16, %c0_17], %21 {strides = array<i32>} : memref<1x64x256xf32, #tpu.memory_space<vmem>>, vector<1x64x256xf32>,
    return
  }
  func.func @transform_0(%arg0: i32) -> (i32, i32, i32) {
    %c0_i32 = arith.constant 0 : i32
    %c0_i32_0 = arith.constant 0 : i32
    %c0_i32_1 = arith.constant 0 : i32
    return %arg0, %c0_i32, %c0_i32_0 : i32, i32, i32
  }
  func.func @transform_1(%arg0: i32) -> (i32, i32) {
    %c0_i32 = arith.constant 0 : i32
    %c0_i32_0 = arith.constant 0 : i32
    %c0_i32_1 = arith.constant 0 : i32
    return %c0_i32, %c0_i32_0 : i32, i32
  }
  func.func @transform_2(%arg0: i32) -> (i32, i32) {
    %c0_i32 = arith.constant 0 : i32
    %c0_i32_0 = arith.constant 0 : i32
    %c0_i32_1 = arith.constant 0 : i32
    return %c0_i32, %c0_i32_0 : i32, i32
  }
  func.func @transform_3(%arg0: i32) -> (i32, i32) {
    %c0_i32 = arith.constant 0 : i32
    %c0_i32_0 = arith.constant 0 : i32
    %c0_i32_1 = arith.constant 0 : i32
    return %c0_i32, %c0_i32_0 : i32, i32
  }
  func.func @transform_4(%arg0: i32) -> (i32, i32) {
    %c0_i32 = arith.constant 0 : i32
    %c0_i32_0 = arith.constant 0 : i32
    %c0_i32_1 = arith.constant 0 : i32
    return %c0_i32, %c0_i32_0 : i32, i32
  }
  func.func @transform_5(%arg0: i32) -> (i32, i32, i32) {
    %c0_i32 = arith.constant 0 : i32
    %c0_i32_0 = arith.constant 0 : i32
    %c0_i32_1 = arith.constant 0 : i32
    return %arg0, %c0_i32, %c0_i32_0 : i32, i32, i32
  }
}

</mosaic_0001>

<bundles_post_ra>
// kernel: tpu_custom_call.1
= control target key start
LH: loop header
LB: loop body
LE: loop exit
PB: predicated region body
PF: predicated region fallthrough
CT: control target
= control target key end

     0   :  { %10 = vsyncpa [#allocation3], 0  ;;  %s1248_s0 = inlined_call_operand.hbm [shape: f32[2,64,256], index: 0, kind: input, shape index: {}]   ;;  %s1249_s1 = inlined_call_operand.vmem [shape: f32[4,64], index: 1, kind: input, shape index: {}]   ;;  %s1250_s2 = inlined_call_operand.vmem [shape: f32[1,4], index: 2, kind: input, shape index: {}]   ;;  %s1251_s3 = inlined_call_operand.vmem [shape: f32[64,4], index: 3, kind: input, shape index: {}]   ;;  %s1252_s4 = inlined_call_operand.vmem [shape: f32[1,64], index: 4, kind: input, shape index: {}]   ;;  %s1253_s5 = inlined_call_operand.hbm [shape: f32[2,64,256], index: 5, kind: output, shape index: {}]  }
   0x1   :  { %12 = vsyncpa [#allocation3 + $0x1], 0 }
   0x2   :  { %13 = vsyncpa [#allocation4], 0 }
   0x3   :  { %15 = vsyncpa [#allocation4 + $0x1], 0  ;;  %s951_s18 = smov 0   ;;  %s953_s19 = smov 0  }
   0x4   :  { %s955_s20 = smov 0   ;;  %s957_s21 = smov 0  }
   0x5 LB: > { %s972_s22 = sadd.s32 4294967295, %s911_s21   ;;  %s700_s23 = sadd.s32 4294967294, %s911_s21   ;;  %s911_s21 = sphi %s957_s21, %s1268_s21   ;;  %s907_s20 = sphi %s955_s20, %s1267_s20   ;;  %s903_s19 = sphi %s953_s19, %s1266_s19   ;;  %s899_s18 = sphi %s951_s18, %s1265_s18  }
   0x6   : > { %s976_s24 = sadd.s32 1, %s911_s21   ;;  %s28_s25 = sadd.s32 1, %s907_s20 }
   0x7   : > { %s25_s26 = ssub.s32 %s911_s21, %s976_s24  ;;  %p35_p0 = scmp.ne.s32.totalorder %s907_s20, %s903_s19 }
   0x8   : > { %p26_p1 = scmp.eq.s32.totalorder %s25_s26, 0  ;;  %p36_p2 = scmp.eq.s32.totalorder %s911_s21, 0 }
   0x9   : > { %p41_p3 = scmp.ne.s32.totalorder %s903_s19, %s899_s18  ;;  %p42_p4 = scmp.eq.s32.totalorder %s972_s22, 0 }
   0xa   : > { %s988_s27 = scalar_select %p26_p1, %s907_s20, %s28_s25  }
   0xb   : > { %p990_p5 = por %p36_p2, %p35_p0  ;;  %p994_p6 = por %p42_p4, %p41_p3 }
   0xc   : > { %p149_p7 = scmp.eq.s32.totalorder %s972_s22, 1  ;;  %p155_p8 = scmp.eq.s32.totalorder %s700_s23, 1 }
   0xd   : > { %s1257_s29 = scalar_select %p994_p6, 1, 0 }
   0xe   : > { %p775_p10 = scmp.lt.s32.totalorder %s911_s21, 2  ;;  %p1001_p11 = por %p149_p7, %p35_p0 }
   0xf   : > { %p1005_p12 = por %p155_p8, %p41_p3  ;;  %s187_s7 = sand.u32 1, %s907_s20  }
  0x10   : > { %s1258_s30 = scalar_select %p1001_p11, 1, 0 }
  0x11   : > { %s1259_s6 = scalar_select %p1005_p12, 1, 0 }
  0x12   : > { %s726_s8 = sshll.u32 %s911_s21, 11  ;;  %s703_s9 = sshll.u32 %s187_s7, 7 }
  0x13   : > { %s1014_s12 = scalar_lea.hbm %s1248_s0, %s726_s8  ;;  %s191_s13 = scalar_lea.vmem [#allocation2], %s703_s9 }
  0x14   : > { %s198_s14 = sshll.u32 %s191_s13, 4  ;;  %p1018_p13 = pnand %p775_p10, %p990_p5  ;;  %s1022_s14 = int_to_ptr.vmem [resolvable:$true] %s198_s14 }
  0x15   : > { %s1024_s16 = scalar_lea.sflag [#allocation3], %s187_s7  ;;  %s819_s17 = scalar_lea.hbm %s1014_s12, 2048 }
  0x16   : > { %p820_p0 = scmp.ne.s32.totalorder %s1014_s12, %s819_s17  ;;  %p821_p1 = pneg %p1018_p13 }
  0x17   : > { %s824_s26 = scalar_lea.hbm %s1248_s0, 4096  ;;  %p825_p4 = scmp.lt.s32.totalorder %s1014_s12, %s1248_s0 }
  0x18   : > { %p822_p2 = pnand %p821_p1, %p820_p0  ;;  %p826_p5 = scmp.lt.s32.totalorder %s824_s26, %s819_s17 }
  0x1a   : > { %p823_p3 = pneg %p822_p2  ;;  %p827_p7 = por %p826_p5, %p825_p4 }
  0x1c   : > { %p828_p8 = pnand %p827_p7, %p823_p3 }
  0x1e   : > { %831 = shalt.err (!%p828_p8)
}
  0x1f   : > { %s832_s7 = scalar_lea.vmem %s1022_s14, 2048  ;;  %s913_s9 = smov [#allocation2]  }
  0x20   : > { %p833_p10 = scmp.ne.s32.totalorder %s1022_s14, %s832_s7  ;;  %s837_s10 = sshll.u32 %s913_s9, 4  ;;  %s838_s10 = int_to_ptr.vmem [resolvable:$false] %s837_s10 }
  0x21   : > { %s839_s11 = scalar_lea.vmem %s838_s10, 4096  ;;  %p840_p2 = scmp.lt.s32.totalorder %s1022_s14, %s838_s10 }
  0x22   : > { %p835_p9 = pnand %p833_p10, %p821_p1  ;;  %p841_p12 = scmp.lt.s32.totalorder %s839_s11, %s832_s7 }
  0x24   : > { %p836_p0 = pneg %p835_p9  ;;  %p842_p11 = por %p841_p12, %p840_p2 }
  0x26   : > { %p843_p6 = pnand %p842_p11, %p836_p0 }
  0x28   : > { %846 = shalt.err (!%p843_p6)
}
  0x29   : > { %s914_s13 = smov 256   ;;  %s915_s17 = smov 16  }
  0x2a   : > { %770 = dma.hbm_to_vmem [thread:$0]  (!%p1018_p13), %s1014_s12, 2048, %s1022_s14, %s1024_s16, %s914_s13, %s914_s13, %s915_s17  }
  0x2b   : > { %p706_p9 = scmp.ge.s32.totalorder %s911_s21, 1  ;;  %p206_p1 = scmp.lt.s32.totalorder %s911_s21, 3 }
  0x2d   : > { %p207_p3 = pnand %p706_p9, %p206_p1 }
  0x2e   : > { %s1048_s23 = sand.u32 (!%p207_p3), 1, %s903_s19   ;;  %p1261_p6 = scmp.ne.s32.totalorder (!%p207_p3), %s1257_s29, 0 }
  0x2f   : > { %210 = sbr.rel (%p207_p3) target bundleno = 785 (0x311), region = 40  ;;  %s707_s25 = sshll.u32 (!%p207_p3), %s1048_s23, 7 }
  0x30   : > { %s213_s26 = scalar_lea.sflag (!%p207_p3), [#allocation3], %s1048_s23  ;;  %s216_s28 = scalar_lea.vmem (!%p207_p3), [#allocation2], %s707_s25 }
  0x34   : > { %890 = dma.done.wait (%p1261_p6), %s213_s26, 2048  }
  0x35   : > { %892 = vsyncadd (%p1261_p6), %s213_s26, 4294965248  ;;  %v1058_v0 = vld [vmem:[%s216_s28] sm:$0xff]  ;;  %v1060_v1 = vld [vmem:[%s216_s28 + $0x8] sm:$0xff]  ;;  %v916_v24 = vmov 0.0   ;;  %vm356_vm0 = vcmask 523264   ;;  %vm917_vm1 = vmmov 0   ;;  %v301_v33 = vlaneseq }
  0x36   : > { %v1062_v2 = vld [vmem:[%s216_s28 + $0x20] sm:$0xff]  ;;  %v259_v3 = vadd.f32 %v1060_v1, %v1058_v0  ;;  %v1066_v4 = vld [vmem:[%s216_s28 + $0x28] sm:$0xff]  ;;  %v1068_v5 = vld [vmem:[%s216_s28 + $0x10] sm:$0xff]  ;;  %739 = vmatprep.subr.mxu0 %v916_v24  ;;  %744 = vmatprep.subr.mxu1 %v916_v24  ;;  %vm442_vm2 = vcmask 31744   ;;  %vm312_vm3 = vcmask 130112   ;;  %vm319_vm4 = vcmask 195712  }
  0x37   : > { %v1070_v6 = vld [vmem:[%s216_s28 + $0x18] sm:$0xff]  ;;  %v265_v7 = vadd.f32 %v1066_v4, %v1062_v2  ;;  %v1074_v8 = vld [vmem:[%s216_s28 + $0x30] sm:$0xff]  ;;  %v1082_v12 = vld [vmem:[%s216_s28 + $0x40] sm:$0xff]  ;;  %741 = vmatprep.mubr.msk.f32.mxu0 %vm917_vm1, %v916_v24  ;;  %760 = vmatprep.mubr.msk.f32.mxu1 %vm917_vm1, %v916_v24  ;;  %v302_v34 = vand.u32 127, %v301_v33  ;;  %v1138_v35 = vshrl.u32 %v301_v33, 7  ;;  %vm326_vm5 = vcmask 261312  }
  0x38   : > { %v1076_v9 = vld [vmem:[%s216_s28 + $0x38] sm:$0xff]  ;;  %260 = vadd.xlane.f32.xlu0 %v259_v3  ;;  %v262_v10 = vadd.f32 %v1070_v6, %v1068_v5  ;;  %v1084_v13 = vld [vmem:[%s216_s28 + $0x48] sm:$0xff]  ;;  %v1086_v14 = vld [vmem:[%s216_s28 + $0x50] sm:$0xff]  ;;  %vm333_vm6 = vcmask 326912   ;;  %vm340_vm7 = vcmask 392512   ;;  %vm347_vm8 = vcmask 458112  }
  0x39   : > { %266 = vadd.xlane.f32.xlu1 %v265_v7  ;;  %v268_v11 = vadd.f32 %v1076_v9, %v1074_v8  ;;  %v1088_v15 = vld [vmem:[%s216_s28 + $0x58] sm:$0xff]  ;;  %v271_v16 = vadd.f32 %v1084_v13, %v1082_v12  ;;  %v1094_v18 = vld [vmem:[%s216_s28 + $0x60] sm:$0xff]  ;;  %v1096_v19 = vld [vmem:[%s216_s28 + $0x68] sm:$0xff]  ;;  %v307_v36 = vadd.s32 4294967288, %v302_v34  ;;  %v314_v38 = vadd.s32 4294967280, %v302_v34  ;;  %s1168_s10 = scalar_lea.vmem [#allocation5], %s707_s25 }
  0x3a   : > { %v274_v17 = vadd.f32 %v1088_v15, %v1086_v14  ;;  %v1098_v20 = vld [vmem:[%s216_s28 + $0x70] sm:$0xff]  ;;  %v1100_v21 = vld [vmem:[%s216_s28 + $0x78] sm:$0xff]  ;;  %v277_v22 = vadd.f32 %v1096_v19, %v1094_v18  ;;  %v291_v25 = vld [vmem:[%s1249_s1] sm:$0xf]  ;;  %v321_v39 = vadd.s32 4294967272, %v302_v34  ;;  %v305_v41 = vsub.s32 %v302_v34, %v1138_v35  ;;  %s727_s25 = sshll.u32 %s972_s22, 11 }
  0x3b   : > { %v280_v23 = vadd.f32 %v1100_v21, %v1098_v20  ;;  %740 = vmatpush3.xpose.msk.msra.mxu0 %vm356_vm0, %v291_v25  ;;  %v440_v26 = vld [vmem:[%s1251_s3 + $0x38] sm:$0xff]  ;;  %v439_v27 = vld [vmem:[%s1251_s3 + $0x30] sm:$0xff]  ;;  %v438_v28 = vld [vmem:[%s1251_s3 + $0x28] sm:$0xff]  ;;  %v310_v43 = vsub.s32 %v307_v36, %v1138_v35  ;;  %v328_v44 = vadd.s32 4294967264, %v302_v34  ;;  %v317_v45 = vsub.s32 %v314_v38, %v1138_v35  ;;  %s627_s11 = sshll.u32 %s1168_s10, 4  ;;  %s1199_s26 = scalar_lea.hbm %s1253_s5, %s727_s25  ;;  %s1201_s11 = int_to_ptr.vmem [resolvable:$true] %s627_s11 }
  0x3c   : > { %263 = vadd.xlane.f32.xlu0 %v262_v10  ;;  %745 = vmatpush3.xpose.msk.msra.mxu1 %vm442_vm2, %v440_v26  ;;  %v437_v29 = vld [vmem:[%s1251_s3 + $0x20] sm:$0xff]  ;;  %v436_v30 = vld [vmem:[%s1251_s3 + $0x18] sm:$0xff]  ;;  %v435_v31 = vld [vmem:[%s1251_s3 + $0x10] sm:$0xff]  ;;  %v324_v48 = vsub.s32 %v321_v39, %v1138_v35  ;;  %v335_v49 = vadd.s32 4294967256, %v302_v34  ;;  %v342_v56 = vadd.s32 4294967248, %v302_v34  ;;  %v349_v61 = vadd.s32 4294967240, %v302_v34 }
  0x3d   : > { %269 = vadd.xlane.f32.xlu1 %v268_v11  ;;  %746 = vmatprep.subr.mxu1 %v916_v24  ;;  %v434_v32 = vld [vmem:[%s1251_s3 + $0x8] sm:$0xff]  ;;  %v331_v55 = vsub.s32 %v328_v44, %v1138_v35  ;;  %vm354_vm9 = vcmask 523712   ;;  %v433_v34 = vld [vmem:[%s1251_s3] sm:$0xff]  ;;  %s614_s22 = scalar_lea.sflag [#allocation4], %s1048_s23  ;;  %s847_s28 = scalar_lea.vmem %s1201_s11, 2048 }
  0x3e   : > { %v338_v60 = vsub.s32 %v335_v49, %v1138_v35  ;;  %v292_v36 = vld [vmem:[%s1250_s2] sm:$0x1]  ;;  %p848_p11 = scmp.ne.s32.totalorder %s1201_s11, %s847_s28  ;;  %p1262_p12 = scmp.ne.s32.totalorder %s1258_s30, 0 }
  0x3f   : > { %s918_s29 = smov [#allocation5]  }
  0x40   : > { %272 = vadd.xlane.f32.xlu0 %v271_v16  ;;  %747 = vmatpush3.xpose.msk.msra.mxu1 %vm442_vm2, %v439_v27  ;;  %p849_p13 = pnand %p848_p11, %p1262_p12  ;;  %s851_s12 = sshll.u32 %s918_s29, 4  ;;  %s852_s12 = int_to_ptr.vmem [resolvable:$false] %s851_s12 }
  0x41   : > { %275 = vadd.xlane.f32.xlu1 %v274_v17  ;;  %748 = vmatprep.subr.mxu1 %v916_v24  ;;  %v345_v17 = vsub.s32 %v342_v56, %v1138_v35  ;;  %s853_s14 = scalar_lea.vmem %s852_s12, 4096  ;;  %p854_p5 = scmp.lt.s32.totalorder %s1201_s11, %s852_s12 }
  0x42   : > { %p850_p4 = pneg %p849_p13  ;;  %p855_p7 = scmp.lt.s32.totalorder %s853_s14, %s847_s28 }
  0x44   : > { %278 = vadd.xlane.f32.xlu0 %v277_v22  ;;  %749 = vmatpush3.xpose.msk.msra.mxu1 %vm442_vm2, %v438_v28  ;;  %p856_p8 = por %p855_p7, %p854_p5 }
  0x45   : > { %281 = vadd.xlane.f32.xlu1 %v280_v23  ;;  %750 = vmatprep.subr.mxu1 %v916_v24 }
  0x46   : > { %p857_p10 = pnand %p856_p8, %p850_p4 }
  0x48   : > { %751 = vmatpush3.xpose.msk.msra.mxu1 %vm442_vm2, %v437_v29 }
  0x49   : > { %752 = vmatprep.subr.mxu1 %v916_v24 }
  0x4c   : > { %753 = vmatpush3.xpose.msk.msra.mxu1 %vm442_vm2, %v436_v30 }
  0x4d   : > { %754 = vmatprep.subr.mxu1 %v916_v24 }
  0x50   : > { %755 = vmatpush3.xpose.msk.msra.mxu1 %vm442_vm2, %v435_v31 }
  0x51   : > { %756 = vmatprep.subr.mxu1 %v916_v24 }
  0x54   : > { %757 = vmatpush3.xpose.msk.msra.mxu1 %vm442_vm2, %v434_v32 }
  0x55   : > { %758 = vmatprep.subr.mxu1 %v916_v24  ;;  %v352_v24 = vsub.s32 %v349_v61, %v1138_v35 }
  0x58   : > { %759 = vmatpush3.xpose.msk.msra.mxu1 %vm442_vm2, %v433_v34 }
  0xc1   : > { %v261_v37 = vpop.xlane.xlu0 %260 }
  0xc2   : > { %v267_v40 = vpop.xlane.xlu1 %266  ;;  %v283_v42 = vmul.f32 0.00390625, %v261_v37 }
  0xc3   : > { %v285_v46 = vmul.f32 0.00390625, %v267_v40 }
  0xc4   : > { %v306_v53 = vrot.slane %v283_v42, %v305_v41  ;;  %v441_v41 = vld [vmem:[%s1252_s4] sm:$0x1] }
  0xc5   : > { %v264_v47 = vpop.xlane.xlu0 %263  ;;  %v318_v57 = vrot.slane %v285_v46, %v317_v45 }
  0xc6   : > { %v284_v50 = vmul.f32 0.00390625, %v264_v47  ;;  %v270_v51 = vpop.xlane.xlu1 %269 }
  0xc7   : > { %v286_v52 = vmul.f32 0.00390625, %v270_v51 }
  0xc8   : > { %v311_v54 = vrot.slane %v284_v50, %v310_v43 }
  0xc9   : > { %v325_v58 = vrot.slane %v286_v52, %v324_v48  ;;  %v273_v59 = vpop.xlane.xlu0 %272  ;;  %v548_v48 = vsub.s32 0, %v1138_v35 }
  0xca   : > { %v313_v62 = vsel %vm312_vm3, %v311_v54, %v306_v53  ;;  %v287_v63 = vmul.f32 0.00390625, %v273_v59  ;;  %v276_v3 = vpop.xlane.xlu1 %275 }
  0xcb   : > { %v320_v7 = vsel %vm319_vm4, %v318_v57, %v313_v62  ;;  %v288_v10 = vmul.f32 0.00390625, %v276_v3 }
  0xcc   : > { %v327_v11 = vsel %vm326_vm5, %v325_v58, %v320_v7  ;;  %v332_v16 = vrot.slane %v287_v63, %v331_v55 }
  0xcd   : > { %v339_v22 = vrot.slane %v288_v10, %v338_v60  ;;  %v279_v23 = vpop.xlane.xlu0 %278 }
  0xce   : > { %v334_v25 = vsel %vm333_vm6, %v332_v16, %v327_v11  ;;  %v289_v26 = vmul.f32 0.00390625, %v279_v23  ;;  %v282_v27 = vpop.xlane.xlu1 %281 }
  0xcf   : > { %v290_v28 = vmul.f32 0.00390625, %v282_v27  ;;  %v341_v30 = vsel %vm340_vm7, %v339_v22, %v334_v25 }
  0xd0   : > { %v346_v29 = vrot.slane %v289_v26, %v345_v17 }
  0xd1   : > { %v353_v31 = vrot.slane %v290_v28, %v352_v24 }
  0xd2   : > { %v348_v32 = vsel %vm347_vm8, %v346_v29, %v341_v30 }
  0xd3   : > { %v355_v33 = vsel %vm354_vm9, %v353_v31, %v348_v32 }
  0xd4   : > { %742 = vmatmul.mubr.msk.f32.vlgmr.msra.gmra.mxu0 %vm356_vm0, %v355_v33 }
 0x194   : > { %v428_v37 = vpop.f32.mrf.mxu0 }
 0x195   : > { %v429_v38 = vadd.f32 %v428_v37, %v292_v36 }
 0x196   : > { %v743_v39 = vpop.f32.mrf.mxu0 }
 0x197   : > { %v432_v40 = vmax.f32 %v429_v38, 0.0 }
 0x199   : > { %761 = vmatmul.mubr.msk.f32.vlgmr.msra.gmra.mxu1 %vm442_vm2, %v432_v40 }
 0x259   : > { %v536_v42 = vpop.f32.mrf.mxu1 }
 0x25a   : > { %v537_v43 = vadd.f32 %v536_v42, %v441_v41 }
 0x25b   : > { %v762_v44 = vpop.f32.mrf.mxu1 }
 0x25c   : > { %v720_v45 = vmul.f32 -1.442695, %v537_v43 }
 0x25e   : > { %815 = vpow2.f32 %v720_v45 }
 0x26b   : > { %v816_v46 = vpop.eup %815 }
 0x26c   : > { %v543_v47 = vadd.f32 1.0, %v816_v46 }
 0x26e   : > { %817 = vrcp.f32 %v543_v47 }
 0x27b   : > { %v818_v49 = vpop.eup %817 }
 0x27c   : > { %v549_v50 = vrot.slane %v818_v49, %v548_v48 }
 0x27e   : > { %555 = vbcast.lane.b32.xlu1 %v549_v50, 264  ;;  %551 = vbcast.lane.b32.xlu0 %v549_v50, 256 }
 0x282   : > { %559 = vbcast.lane.b32.xlu1 %v549_v50, 272  ;;  %567 = vbcast.lane.b32.xlu0 %v549_v50, 288 }
 0x286   : > { %563 = vbcast.lane.b32.xlu1 %v549_v50, 280  ;;  %575 = vbcast.lane.b32.xlu0 %v549_v50, 304 }
 0x28a   : > { %571 = vbcast.lane.b32.xlu1 %v549_v50, 296 }
 0x28e   : > { %579 = vbcast.lane.b32.xlu1 %v549_v50, 312 }
 0x2f0   : > { %v556_v51 = vpop.permute.xlu1 %555  ;;  %v552_v52 = vpop.permute.xlu0 %551 }
 0x2f1   : > { %v583_v53 = vmul.f32 %v556_v51, %v1068_v5  ;;  %v584_v54 = vmul.f32 %v556_v51, %v1070_v6  ;;  %v581_v55 = vmul.f32 %v552_v52, %v1058_v0  ;;  %v582_v35 = vmul.f32 %v552_v52, %v1060_v1 }
 0x2f3   : > { %599 = vst [vmem:[%s1168_s10 + $0x10] sm:$0xff] %v583_v53  ;;  %600 = vst [vmem:[%s1168_s10 + $0x18] sm:$0xff] %v584_v54 }
 0x2f4   : > { %597 = vst [vmem:[%s1168_s10] sm:$0xff] %v581_v55  ;;  %598 = vst [vmem:[%s1168_s10 + $0x8] sm:$0xff] %v582_v35  ;;  %v560_v5 = vpop.permute.xlu1 %559  ;;  %v568_v0 = vpop.permute.xlu0 %567 }
 0x2f5   : > { %v585_v1 = vmul.f32 %v560_v5, %v1062_v2  ;;  %v586_v6 = vmul.f32 %v560_v5, %v1066_v4  ;;  %v589_v56 = vmul.f32 %v568_v0, %v1082_v12  ;;  %v590_v57 = vmul.f32 %v568_v0, %v1084_v13 }
 0x2f7   : > { %601 = vst [vmem:[%s1168_s10 + $0x20] sm:$0xff] %v585_v1  ;;  %602 = vst [vmem:[%s1168_s10 + $0x28] sm:$0xff] %v586_v6 }
 0x2f8   : > { %605 = vst [vmem:[%s1168_s10 + $0x40] sm:$0xff] %v589_v56  ;;  %606 = vst [vmem:[%s1168_s10 + $0x48] sm:$0xff] %v590_v57  ;;  %v564_v58 = vpop.permute.xlu1 %563  ;;  %v576_v59 = vpop.permute.xlu0 %575 }
 0x2f9   : > { %v587_v2 = vmul.f32 %v564_v58, %v1074_v8  ;;  %v588_v60 = vmul.f32 %v564_v58, %v1076_v9  ;;  %v593_v4 = vmul.f32 %v576_v59, %v1094_v18  ;;  %v594_v12 = vmul.f32 %v576_v59, %v1096_v19 }
 0x2fb   : > { %603 = vst [vmem:[%s1168_s10 + $0x30] sm:$0xff] %v587_v2  ;;  %604 = vst [vmem:[%s1168_s10 + $0x38] sm:$0xff] %v588_v60 }
 0x2fc   : > { %609 = vst [vmem:[%s1168_s10 + $0x60] sm:$0xff] %v593_v4  ;;  %610 = vst [vmem:[%s1168_s10 + $0x68] sm:$0xff] %v594_v12  ;;  %v572_v13 = vpop.permute.xlu1 %571 }
 0x2fd   : > { %v591_v61 = vmul.f32 %v572_v13, %v1086_v14  ;;  %v592_v62 = vmul.f32 %v572_v13, %v1088_v15 }
 0x2ff   : > { %607 = vst [vmem:[%s1168_s10 + $0x50] sm:$0xff] %v591_v61  ;;  %608 = vst [vmem:[%s1168_s10 + $0x58] sm:$0xff] %v592_v62 }
 0x300   : > { %v580_v8 = vpop.permute.xlu1 %579 }
 0x301   : > { %v595_v9 = vmul.f32 %v580_v8, %v1098_v20  ;;  %v596_v14 = vmul.f32 %v580_v8, %v1100_v21 }
 0x303   : > { %611 = vst [vmem:[%s1168_s10 + $0x70] sm:$0xff] %v595_v9  ;;  %612 = vst [vmem:[%s1168_s10 + $0x78] sm:$0xff] %v596_v14 }
 0x304   : > { %860 = shalt.err (!%p857_p10)
}
 0x305   : > { %s861_s15 = scalar_lea.hbm %s1199_s26, 2048  ;;  %s865_s7 = scalar_lea.hbm %s1253_s5, 4096 }
 0x306   : > { %p862_p0 = scmp.ne.s32.totalorder %s1199_s26, %s861_s15  ;;  %p866_p1 = scmp.lt.s32.totalorder %s1199_s26, %s1253_s5 }
 0x307   : > { %p867_p3 = scmp.lt.s32.totalorder %s865_s7, %s861_s15 }
 0x308   : > { %p863_p2 = pnand %p862_p0, %p1262_p12 }
 0x309   : > { %p868_p6 = por %p867_p3, %p866_p1 }
 0x30a   : > { %p864_p9 = pneg %p863_p2 }
 0x30c   : > { %p869_p11 = pnand %p868_p6, %p864_p9 }
 0x30e   : > { %872 = shalt.err (!%p869_p11)
}
 0x30f   : > { %s919_s25 = smov 256   ;;  %s920_s13 = smov 16  }
 0x310   : > { %765 = dma.vmem_to_hbm [thread:$0]  (%p1262_p12), %s1201_s11, 2048, %s1199_s26, %s614_s22, %s919_s25, %s919_s25, %s920_s13  }
 0x311 PF: > { %s642_s17 = sand.u32 1, %s899_s18   ;;  %p1263_p13 = scmp.ne.s32.totalorder %s1259_s6, 0 }
 0x312   : > { %p1264_p4 = scmp.ge.s32.totalorder %s911_s21, 2  ;;  %s643_s28 = scalar_lea.sflag [#allocation4], %s642_s17 }
 0x314   : > { %p772_p5 = pnand %p1264_p4, %p1263_p13 }
 0x316   : > { %p773_p7 = pneg %p772_p5 }
 0x318   : > { %894 = dma.done.wait (%p773_p7), %s643_s28, 2048  }
 0x319   : > { %896 = vsyncadd (%p773_p7), %s643_s28, 4294965248  ;;  %p18_p8 = scmp.ge.s32.totalorder %s976_s24, 4   ;;  %s1265_s18 = smov %s903_s19 }
 0x31a   : > { %s1266_s19 = smov %s907_s20  ;;  %s1267_s20 = smov %s988_s27 }
 0x31b   : > { %s1268_s21 = smov %s976_s24  ;;  %20 = sbr.rel (!%p18_p8) target bundleno = 5 (0x5), region = 85 }
 0x320   :  { %648 = vsyncpa [#allocation3], 1 }
 0x321   :  { %650 = vsyncpa [#allocation3 + $0x1], 1 }
 0x322   :  { %651 = vsyncpa [#allocation4], 1 }
 0x323   :  { %653 = vsyncpa [#allocation4 + $0x1], 1 }

</bundles_post_ra>
